<compile_context>
chip_gen: v7x
topology: tpu7x:2x2x1
jax: 0.10.0
libtpu: 0.0.40
codegen_flags: <defaults>
</compile_context>

<pallas_src>
import jax
import jax.numpy as jnp
from jax import lax
from jax.experimental import pallas as pl
from jax.experimental.pallas import tpu as pltpu


def _q_tile(t):
    """q-row tile size: 128 when T is a multiple of 128 (>128), else the full T."""
    return 128 if (t % 128 == 0 and t > 128) else t


def _head_kernel(x_ref, wqkv_ref, o_ref):
    # x_ref: (Bblk, T, C) block; wqkv_ref: (C, 3*Hp) bf16 (Wq pre-scaled, zero-padded);
    # o_ref: (Bblk, T, Hp) lane-dense output block.
    bblk, t, c = x_ref.shape
    hp = o_ref.shape[-1]

    # Fused QKV projection: one bf16 MXU matmul over the flattened (Bblk*T, C) rows.
    # f32 accumulation happens inside the MXU; a single cast right after the dot keeps
    # the largest live intermediate at 2 bytes/elem.
    x2d = x_ref[...].reshape(bblk * t, c).astype(jnp.bfloat16)
    qkv = jnp.dot(x2d, wqkv_ref[...], preferred_element_type=jnp.float32)
    qkv = qkv.astype(jnp.bfloat16).reshape(bblk, t, 3 * hp)

    q = qkv[:, :, 0 * hp:1 * hp]   # scale C**-0.5 already folded into Wq columns
    k = qkv[:, :, 1 * hp:2 * hp]
    v = qkv[:, :, 2 * hp:3 * hp]

    tq = _q_tile(t)
    n_qt = t // tq

    # Static (unrolled) loop over q-row tiles; causality at tile granularity means the
    # tile of q rows [r0, r0+tq) only ever attends to kv columns [0, r0+tq).
    for qt in range(n_qt):
        r0 = qt * tq
        kv_len = r0 + tq                      # static per unrolled iteration

        q_t = q[:, r0:r0 + tq, :]             # (bblk, tq, hp) bf16
        k_t = k[:, :kv_len, :]                # (bblk, kv,  hp) bf16
        v_t = v[:, :kv_len, :]

        # Attention scores: contract the shared head axis directly (no XLU transpose).
        s = jnp.einsum("bqd,bkd->bqk", q_t, k_t,
                       preferred_element_type=jnp.float32)        # (bblk, tq, kv) f32

        # Causal mask from 2-D iotas, broadcast over batch. Large finite negative
        # instead of -inf so a fully-masked row can never produce inf-inf NaN.
        rows = lax.broadcasted_iota(jnp.int32, (tq, kv_len), 0) + r0
        cols = lax.broadcasted_iota(jnp.int32, (tq, kv_len), 1)
        s = jnp.where((cols <= rows)[None, :, :], s, -1e30)

        # Softmax pieces in f32; normalization deferred until after the PV matmul.
        m = jnp.max(s, axis=-1, keepdims=True)
        e = jnp.exp(s - m)                                        # (bblk, tq, kv) f32
        denom = jnp.sum(e, axis=-1, keepdims=True)                # (bblk, tq, 1)

        # Dropout: eval mode -> identity.

        out_un = jnp.einsum("bqk,bkd->bqd", e.astype(jnp.bfloat16), v_t,
                            preferred_element_type=jnp.float32)   # (bblk, tq, hp) f32
        out = out_un * pl.reciprocal(denom, approx=True)          # normalize (tq, hp) only
        o_ref[:, r0:r0 + tq, :] = out.astype(o_ref.dtype)


def _choose_bblk(B, T, C, Hp, x_bytes, budget_bytes):
    """Largest divisor of B whose per-step VMEM footprint fits the budget while
    keeping at least min(8, B) grid steps (pipelining + megacore sharding)."""
    tq = _q_tile(T)

    def footprint(bblk):
        x_blk = 2 * bblk * T * C * x_bytes          # double-buffered input block
        o_blk = 2 * bblk * T * Hp * x_bytes         # double-buffered output block
        w_blk = 2 * C * 3 * Hp * 2                  # bf16 fused weight (2 buffers)
        qkv = bblk * T * 3 * Hp * 2                 # bf16 qkv intermediate
        s_e = bblk * tq * T * (4 + 4 + 2)           # f32 scores + f32 exp + bf16 exp
        pv = bblk * tq * Hp * (4 + 4)               # f32 unnormalized + normalized out
        return x_blk + o_blk + w_blk + qkv + s_e + pv

    min_steps = min(8, B)
    best = 1
    for cand in range(1, B + 1):
        if B % cand:
            continue
        if B // cand < min_steps:
            break
        if footprint(cand) <= budget_bytes:
            best = cand
    return best


def head_attention(x, wk, wq, wv, *, bblk=None, vmem_limit_bytes=32 * 1024 * 1024):
    """x: (B, T, C) float32/bfloat16; wk/wq/wv: (C, H) float32 (already transposed)."""
    B, T, C = x.shape
    H = wk.shape[1]
    Hp = ((H + 127) // 128) * 128          # pad head dim to lane-tile width
    scale = float(C) ** -0.5               # module scales by embed dim C, not head size

    if bblk is None:
        bblk = _choose_bblk(B, T, C, Hp,
                            x_bytes=jnp.dtype(x.dtype).itemsize,
                            budget_bytes=vmem_limit_bytes // 4)
    assert B % bblk == 0, "batch must be divisible by the batch block"

    def pad_cols(w):
        return jnp.pad(w, ((0, 0), (0, Hp - H)))

    # Fused, pre-scaled, zero-padded, bf16 QKV weight: one DMA + one MXU pass per step.
    # (Constant-folds under jit when the weights are constants.)
    wqkv = jnp.concatenate(
        [pad_cols(wq * scale), pad_cols(wk), pad_cols(wv)], axis=1
    ).astype(jnp.bfloat16)                                              # (C, 3*Hp)

    out_padded = pl.pallas_call(
        _head_kernel,
        out_shape=jax.ShapeDtypeStruct((B, T, Hp), x.dtype),
        grid_spec=pltpu.PrefetchScalarGridSpec(
            num_scalar_prefetch=0,
            grid=(B // bblk,),
            in_specs=[
                pl.BlockSpec((bblk, T, C), lambda b: (b, 0, 0)),
                pl.BlockSpec((C, 3 * Hp), lambda b: (0, 0)),
            ],
            out_specs=pl.BlockSpec((bblk, T, Hp), lambda b: (b, 0, 0)),
        ),
        compiler_params=pltpu.CompilerParams(
            dimension_semantics=("parallel",),
            vmem_limit_bytes=vmem_limit_bytes,
        ),
    )(x, wqkv)

    return out_padded[..., :H]


def _reference(x, wk, wq, wv):
    B, T, C = x.shape
    k = x @ wk
    q = x @ wq
    v = x @ wv
    wei = jnp.einsum("btd,bsd->bts", q, k) * (C ** -0.5)
    mask = jnp.tril(jnp.ones((T, T), dtype=bool))
    wei = jnp.where(mask[None], wei, -jnp.inf)
    wei = jax.nn.softmax(wei, axis=-1)
    return jnp.einsum("bts,bsh->bth", wei, v)


def _run_case(B, T, C, H, seed):
    key = jax.random.PRNGKey(seed)
    kx, kk, kq, kv = jax.random.split(key, 4)
    x = jax.random.normal(kx, (B, T, C), dtype=jnp.float32)
    wk = jax.random.normal(kk, (C, H), dtype=jnp.float32) * (C ** -0.5)
    wq = jax.random.normal(kq, (C, H), dtype=jnp.float32) * (C ** -0.5)
    wv = jax.random.normal(kv, (C, H), dtype=jnp.float32) * (C ** -0.5)

    out = head_attention(x, wk, wq, wv)
    out = jax.block_until_ready(out)

    ref = _reference(x, wk, wq, wv)
    assert out.shape == (B, T, H)
    max_err = float(jnp.max(jnp.abs(out - ref)))
    # bf16 MXU operands (f32 accumulation) + approx reciprocal vs. all-f32 reference.
    assert jnp.allclose(out, ref, atol=5e-2, rtol=5e-2), (
        "mismatch vs reference: max abs err = %g" % max_err
    )


if __name__ == "__main__":
    # Small shapes consistent with the module's forward (n_embd / block_size scaled down).
    _run_case(B=4, T=16, C=64, H=16, seed=0)
    # Exercise the multi-q-tile causal-skip path (T a multiple of 128, as in block_size=256).
    _run_case(B=2, T=256, C=64, H=16, seed=1)

    print("KERNEL_OK")
</pallas_src>

<mosaic_0001>
module attributes {stable_mosaic.version = 11 : i64} {
  func.func @_head_kernel(%arg0: i32, %arg1: memref<1x16x64xf32, #tpu.memory_space<vmem>>, %arg2: memref<64x384xbf16, #tpu.memory_space<vmem>>, %arg3: memref<1x16x128xf32, #tpu.memory_space<vmem>>) attributes {dimension_semantics = [#tpu.dimension_semantics<parallel>], iteration_bounds = array<i64: 4>, scalar_prefetch = 0 : i64, scratch_operands = 0 : i64, tpu.core_type = #tpu.core_type<tc>, window_params = [{transform_indices = @transform_0, window_bounds = array<i64: 1, 16, 64>}, {pipeline_mode = #tpu.pipeline_mode<synchronous>, transform_indices = @transform_1, window_bounds = array<i64: 64, 384>}, {transform_indices = @transform_2, window_bounds = array<i64: 1, 16, 128>}]} {
    %c0 = arith.constant 0 : index
    %c0_0 = arith.constant 0 : index
    %c0_1 = arith.constant 0 : index
    %0 = vector.load %arg1[%c0, %c0_0, %c0_1] : memref<1x16x64xf32, #tpu.memory_space<vmem>>, vector<1x16x64xf32>
    %1 = vector.shape_cast %0 : vector<1x16x64xf32> to vector<16x64xf32>
    %2 = arith.truncf %1 : vector<16x64xf32> to vector<16x64xbf16>
    %c0_2 = arith.constant 0 : index
    %c0_3 = arith.constant 0 : index
    %3 = vector.load %arg2[%c0_2, %c0_3] : memref<64x384xbf16, #tpu.memory_space<vmem>>, vector<64x384xbf16>
    %cst = arith.constant dense<0.000000e+00> : vector<16x384xf32>
    %4 = tpu.matmul %2, %3, %cst {dimension_numbers = #tpu.dot_dimension_numbers<[1], [0], [0], [1], [0, 0, 1, 1], [], []>} : vector<16x64xbf16>, vector<64x384xbf16>, vector<16x384xf32> -> vector<16x384xf32>
    %5 = arith.truncf %4 : vector<16x384xf32> to vector<16x384xbf16>
    %6 = vector.shape_cast %5 : vector<16x384xbf16> to vector<1x16x384xbf16>
    %7 = vector.extract_strided_slice %6 {offsets = [0, 0, 0], sizes = [1, 16, 128], strides = [1, 1, 1]} : vector<1x16x384xbf16> to vector<1x16x128xbf16>
    %8 = vector.extract_strided_slice %6 {offsets = [0, 0, 128], sizes = [1, 16, 128], strides = [1, 1, 1]} : vector<1x16x384xbf16> to vector<1x16x128xbf16>
    %9 = vector.extract_strided_slice %6 {offsets = [0, 0, 256], sizes = [1, 16, 128], strides = [1, 1, 1]} : vector<1x16x384xbf16> to vector<1x16x128xbf16>
    "tpu.trace_start"() <{level = 10 : i32, message = "bqd,bkd->bqk"}> : () -> ()
    %cst_4 = arith.constant dense<0.000000e+00> : vector<1x16x16xf32>
    %10 = tpu.matmul %7, %8, %cst_4 {dimension_numbers = #tpu.dot_dimension_numbers<[2], [2], [1], [1], [0, 0, 0, 1, 1, 1], [0], [0]>} : vector<1x16x128xbf16>, vector<1x16x128xbf16>, vector<1x16x16xf32> -> vector<1x16x16xf32>
    "tpu.trace_stop"() : () -> ()
    %11 = tpu.iota {dimensions = array<i32: 0>} : vector<16x16xi32>
    %c0_i32 = arith.constant 0 : i32
    %12 = vector.broadcast %c0_i32 : i32 to vector<16x16xi32>
    %13 = arith.addi %11, %12 : vector<16x16xi32>
    %14 = tpu.iota {dimensions = array<i32: 1>} : vector<16x16xi32>
    %15 = arith.cmpi sle, %14, %13 : vector<16x16xi32>
    %16 = vector.shape_cast %15 : vector<16x16xi1> to vector<1x16x16xi1>
    %cst_5 = arith.constant -1.000000e+30 : f32
    %17 = vector.broadcast %cst_5 : f32 to vector<1x16x16xf32>
    %18 = arith.select %16, %10, %17 : vector<1x16x16xi1>, vector<1x16x16xf32>
    %cst_6 = arith.constant dense<0xFF800000> : vector<1x16xf32>
    %19 = vector.multi_reduction <maximumf>, %18, %cst_6 [2] : vector<1x16x16xf32> to vector<1x16xf32>
    %20 = vector.shape_cast %19 : vector<1x16xf32> to vector<1x16x1xf32>
    %21 = vector.broadcast %20 : vector<1x16x1xf32> to vector<1x16x16xf32>
    %22 = arith.subf %18, %21 : vector<1x16x16xf32>
    %23 = math.exp %22 : vector<1x16x16xf32>
    %cst_7 = arith.constant dense<0.000000e+00> : vector<1x16xf32>
    %24 = vector.multi_reduction <add>, %23, %cst_7 [2] : vector<1x16x16xf32> to vector<1x16xf32>
    %25 = vector.shape_cast %24 : vector<1x16xf32> to vector<1x16x1xf32>
    %26 = arith.truncf %23 : vector<1x16x16xf32> to vector<1x16x16xbf16>
    "tpu.trace_start"() <{level = 10 : i32, message = "bqk,bkd->bqd"}> : () -> ()
    %cst_8 = arith.constant dense<0.000000e+00> : vector<1x16x128xf32>
    %27 = tpu.matmul %26, %9, %cst_8 {dimension_numbers = #tpu.dot_dimension_numbers<[2], [1], [1], [2], [0, 0, 0, 1, 1, 2], [0], [0]>} : vector<1x16x16xbf16>, vector<1x16x128xbf16>, vector<1x16x128xf32> -> vector<1x16x128xf32>
    "tpu.trace_stop"() : () -> ()
    %28 = tpu.reciprocal %25 {approx = true} : vector<1x16x1xf32> -> vector<1x16x1xf32>
    %29 = vector.broadcast %28 : vector<1x16x1xf32> to vector<1x16x128xf32>
    %30 = arith.mulf %27, %29 : vector<1x16x128xf32>
    %c0_9 = arith.constant 0 : index
    %c0_10 = arith.constant 0 : index
    %c0_11 = arith.constant 0 : index
    %31 = vector.load %arg3[%c0_9, %c0_10, %c0_11] : memref<1x16x128xf32, #tpu.memory_space<vmem>>, vector<1x16x128xf32>
    tpu.vector_store %arg3[%c0_9, %c0_10, %c0_11], %30 {strides = array<i32>} : memref<1x16x128xf32, #tpu.memory_space<vmem>>, vector<1x16x128xf32>,
    return
  }
  func.func @transform_0(%arg0: i32) -> (i32, i32, i32) {
    %c0_i32 = arith.constant 0 : i32
    %c0_i32_0 = arith.constant 0 : i32
    %c0_i32_1 = arith.constant 0 : i32
    return %arg0, %c0_i32, %c0_i32_0 : i32, i32, i32
  }
  func.func @transform_1(%arg0: i32) -> (i32, i32) {
    %c0_i32 = arith.constant 0 : i32
    %c0_i32_0 = arith.constant 0 : i32
    %c0_i32_1 = arith.constant 0 : i32
    return %c0_i32, %c0_i32_0 : i32, i32
  }
  func.func @transform_2(%arg0: i32) -> (i32, i32, i32) {
    %c0_i32 = arith.constant 0 : i32
    %c0_i32_0 = arith.constant 0 : i32
    %c0_i32_1 = arith.constant 0 : i32
    return %arg0, %c0_i32, %c0_i32_0 : i32, i32, i32
  }
}

</mosaic_0001>

<bundles_post_ra>
// kernel: tpu_custom_call.1
= control target key start
LH: loop header
LB: loop body
LE: loop exit
PB: predicated region body
PF: predicated region fallthrough
CT: control target
= control target key end

     0   :  { %7 = vsyncpa [#allocation3], 0  ;;  %s1088_s0 = inlined_call_operand.hbm [shape: f32[4,16,64], index: 0, kind: input, shape index: {}]   ;;  %s1089_s1 = inlined_call_operand.hbm [shape: bf16[64,384], index: 1, kind: input, shape index: {}]   ;;  %s1090_s2 = inlined_call_operand.hbm [shape: f32[4,16,128], index: 2, kind: output, shape index: {}]  }
   0x1   :  { %9 = vsyncpa [#allocation3 + $0x1], 0 }
   0x2   :  { %10 = vsyncpa [#allocation6], 0 }
   0x3   :  { %11 = vsyncpa [#allocation4], 0 }
   0x4   :  { %13 = vsyncpa [#allocation4 + $0x1], 0  ;;  %s882_s9 = smov 0   ;;  %s884_s10 = smov 0  }
   0x5   :  { %s886_s11 = smov 0   ;;  %s888_s12 = smov 0  }
   0x6 LB: > { %s903_s13 = sadd.s32 4294967295, %s853_s12   ;;  %s569_s14 = sadd.s32 4294967294, %s853_s12   ;;  %s853_s12 = sphi %s888_s12, %s1109_s12   ;;  %s849_s11 = sphi %s886_s11, %s1108_s11   ;;  %s845_s10 = sphi %s884_s10, %s1107_s10   ;;  %s841_s9 = sphi %s882_s9, %s1106_s9  }
   0x7   : > { %p39_p0 = scmp.ne.s32.totalorder %s845_s10, %s841_s9  ;;  %p1091_p1 = scmp.eq.s32.totalorder %s903_s13, 0 }
   0x8   : > { %p90_p3 = scmp.eq.s32.totalorder %s569_s14, 3  ;;  %p570_p5 = scmp.ge.s32.totalorder %s853_s12, 1 }
   0x9   : > { %p912_p4 = por %p1091_p1, %p39_p0  ;;  %p97_p7 = scmp.lt.s32.totalorder %s853_s12, 5 }
   0xa   : > { %p917_p6 = por %p90_p3, %p39_p0  ;;  %s855_s18 = smov [#allocation5]  }
   0xb   : > { %s1094_s15 = scalar_select %p912_p4, 1, 0 }
   0xc   : > { %s1095_s16 = scalar_select %p917_p6, 1, 0 }
   0xd   : > { %p922_p8 = pnand %p570_p5, %p97_p7  ;;  %s109_s19 = sshll.u32 %s855_s18, 4  ;;  %s110_s19 = int_to_ptr.vmem [resolvable:$true] %s109_s19 }
   0xe   : > { %s935_s21 = sadd.s32 1, %s853_s12   ;;  %s26_s22 = sadd.s32 1, %s849_s11 }
   0xf   : > { %s1096_s17 = scalar_select %p922_p8, 1, 0 }
  0x10   : > { %p643_p9 = pneg %p922_p8  ;;  %s23_s23 = ssub.s32 %s853_s12, %s935_s21 }
  0x11   : > { %s725_s26 = scalar_lea.hbm %s1089_s1, 1536 }
  0x12   : > { %p930_p10 = pnand %p643_p9, %p1091_p1  ;;  %p726_p11 = scmp.ne.s32.totalorder %s1089_s1, %s725_s26 }
  0x13   : > { %p732_p3 = scmp.lt.u32.totalorder %s725_s26, %s1089_s1 }
  0x14   : > { %p727_p12 = pneg %p930_p10 }
  0x16   : > { %p728_p13 = pnand %p727_p12, %p726_p11 }
  0x18   : > { %p729_p0 = pneg %p728_p13 }
  0x1a   : > { %p734_p5 = pnand %p732_p3, %p729_p0 }
  0x1c   : > { %737 = shalt.err (!%p734_p5)
}
  0x1d   : > { %s738_s3 = scalar_lea.vmem %s110_s19, 1536  ;;  %p746_p2 = scmp.lt.s32.totalorder %s110_s19, %s110_s19 }
  0x1e   : > { %p739_p7 = scmp.ne.s32.totalorder %s110_s19, %s738_s3  ;;  %p747_p6 = scmp.lt.s32.totalorder %s738_s3, %s738_s3 }
  0x20   : > { %p741_p9 = pnand %p739_p7, %p727_p12  ;;  %p748_p4 = por %p747_p6, %p746_p2 }
  0x22   : > { %p742_p1 = pneg %p741_p9 }
  0x24   : > { %p749_p8 = pnand %p748_p4, %p742_p1 }
  0x26   : > { %752 = shalt.err (!%p749_p8)
}
  0x27   : > { %s856_s4 = smov 192   ;;  %s857_s5 = smov 12  }
  0x28   : > { %646 = dma.hbm_to_vmem [thread:$0]  (!%p930_p10), %s1089_s1, 1536, %s110_s19, [#allocation6], %s856_s4, %s856_s4, %s857_s5  }
  0x29   : > { %p24_p11 = scmp.eq.s32.totalorder %s23_s23, 0  ;;  %p33_p2 = scmp.ne.s32.totalorder %s849_s11, %s845_s10 }
  0x2a   : > { %p34_p1 = scmp.eq.s32.totalorder %s853_s12, 0  ;;  %p656_p4 = scmp.lt.s32.totalorder %s853_s12, 4 }
  0x2b   : > { %s961_s8 = scalar_select %p24_p11, %s849_s11, %s26_s22  }
  0x2c   : > { %p35_p6 = por %p34_p1, %p33_p2  ;;  %p1098_p8 = scmp.eq.s32.totalorder %s903_s13, 3 }
  0x2d   : > { %s123_s18 = sand.u32 1, %s849_s11   ;;  %s600_s24 = sshll.u32 %s853_s12, 8 }
  0x2e   : > { %p965_p12 = por %p1098_p8, %p33_p2  ;;  %s573_s25 = sshll.u32 %s123_s18, 4 }
  0x2f   : > { %s974_s27 = scalar_lea.hbm %s1088_s0, %s600_s24  ;;  %s127_s19 = scalar_lea.vmem [#allocation2], %s573_s25 }
  0x30   : > { %s134_s22 = sshll.u32 %s127_s19, 4  ;;  %p976_p10 = pnand %p656_p4, %p35_p6  ;;  %s980_s22 = int_to_ptr.vmem [resolvable:$true] %s134_s22 }
  0x31   : > { %s982_s28 = scalar_lea.sflag [#allocation3], %s123_s18  ;;  %s753_s29 = scalar_lea.hbm %s974_s27, 256 }
  0x32   : > { %p754_p13 = scmp.ne.s32.totalorder %s974_s27, %s753_s29  ;;  %p755_p0 = pneg %p976_p10 }
  0x33   : > { %s758_s4 = scalar_lea.hbm %s1088_s0, 1024  ;;  %p759_p7 = scmp.lt.u32.totalorder %s974_s27, %s1088_s0 }
  0x34   : > { %p756_p3 = pnand %p755_p0, %p754_p13  ;;  %p760_p9 = scmp.lt.u32.totalorder %s758_s4, %s753_s29 }
  0x35   : > { %p762_p2 = scmp.lt.u32.totalorder %s753_s29, %s974_s27 }
  0x36   : > { %p757_p5 = pneg %p756_p3  ;;  %p761_p11 = por %p760_p9, %p759_p7 }
  0x38   : > { %p763_p1 = por %p762_p2, %p761_p11 }
  0x3a   : > { %p764_p4 = pnand %p763_p1, %p757_p5 }
  0x3c   : > { %767 = shalt.err (!%p764_p4)
}
  0x3d   : > { %s768_s7 = scalar_lea.vmem %s980_s22, 256  ;;  %s858_s18 = smov [#allocation2]  }
  0x3e   : > { %p769_p6 = scmp.ne.s32.totalorder %s980_s22, %s768_s7  ;;  %s773_s24 = sshll.u32 %s858_s18, 4  ;;  %s774_s24 = int_to_ptr.vmem [resolvable:$false] %s773_s24 }
  0x3f   : > { %s775_s25 = scalar_lea.vmem %s774_s24, 512  ;;  %p776_p3 = scmp.lt.s32.totalorder %s980_s22, %s774_s24 }
  0x40   : > { %p771_p8 = pnand %p769_p6, %p755_p0  ;;  %p777_p7 = scmp.lt.s32.totalorder %s775_s25, %s768_s7 }
  0x42   : > { %p772_p13 = pneg %p771_p8  ;;  %p778_p9 = por %p777_p7, %p776_p3 }
  0x44   : > { %p779_p11 = pnand %p778_p9, %p772_p13 }
  0x46   : > { %782 = shalt.err (!%p779_p11)
}
  0x47   : > { %s859_s20 = smov 128   ;;  %s860_s26 = smov 8  }
  0x48   : > { %650 = dma.hbm_to_vmem [thread:$0]  (!%p976_p10), %s974_s27, 256, %s980_s22, %s982_s28, %s859_s20, %s859_s20, %s860_s26  }
  0x49   : > { %p1101_p0 = scmp.ne.s32.totalorder %s1096_s17, 0 }
  0x4a   : > { %s1013_s19 = sand.u32 (!%p1101_p0), 1, %s845_s10   ;;  %p1102_p5 = scmp.ne.s32.totalorder (!%p1101_p0), %s1094_s15, 0 }
  0x4b   : > { %146 = sbr.rel (%p1101_p0) target bundleno = 935 (0x3a7), region = 28  ;;  %s577_s29 = sshll.u32 (!%p1101_p0), %s1013_s19, 4 }
  0x4c   : > { %s149_s30 = scalar_lea.sflag (!%p1101_p0), [#allocation3], %s1013_s19  ;;  %s152_s3 = scalar_lea.vmem (!%p1101_p0), [#allocation2], %s577_s29 }
  0x52   : > { %828 = dma.done.wait (%p1102_p5), %s149_s30, 256  }
  0x53   : > { %830 = vsyncadd (%p1102_p5), %s149_s30, 4294967040  ;;  %p1103_p10 = scmp.eq.s32.totalorder %s903_s13, 0 }
  0x55   : > { %832 = dma.done.wait (%p1103_p10), [#allocation6], 1536   ;;  %p1104_p2 = pmov %p1103_p10 }
  0x56   : > { %v861_v0 = vmov 0   ;;  %v701_v1 = vld [vmem:[#allocation5 + $0x4] ss:$12 sps:$4 sm:$0xff]   ;;  %v703_v2 = vld [vmem:[#allocation5] ss:$12 sps:$4 sm:$0xff]   ;;  %vm261_vm0 = vcmask 523264   ;;  %v393_v23 = vlaneseq }
  0x57   : > { %834 = vsyncadd (%p1104_p2), [#allocation6], 4294965760  ;;  %297 = vmatprep.mubr.bf16.mxu0 %v861_v0  ;;  %265 = vmatprep.subr.bf16.mxu0 %v701_v1  ;;  %v704_v3 = vld [vmem:[#allocation5 + $0x1c] ss:$12 sps:$4 sm:$0xff]   ;;  %v706_v4 = vld [vmem:[#allocation5 + $0x18] ss:$12 sps:$4 sm:$0xff]  }
  0x58   : > { %266 = vmatpush1.bf16.msra.mxu0 %v703_v2  ;;  %v707_v5 = vld [vmem:[#allocation5 + $0x34] ss:$12 sps:$4 sm:$0xff]   ;;  %v709_v6 = vld [vmem:[#allocation5 + $0x30] ss:$12 sps:$4 sm:$0xff]   ;;  %v710_v7 = vld [vmem:[#allocation5 + $0x4c] ss:$12 sps:$4 sm:$0xff]  }
  0x59   : > { %267 = vmatprep.subr.bf16.mxu0 %v704_v3  ;;  %v712_v8 = vld [vmem:[#allocation5 + $0x48] ss:$12 sps:$4 sm:$0xff]   ;;  %v862_v12 = vmov 0.0   ;;  %vm863_vm1 = vmmov 0   ;;  %v714_v14 = vld [vmem:[#allocation5 + $0x20] ss:$12 sps:$4 sm:$0xff]  }
  0x5a   : > { %v178_v9 = vld [vmem:[%s152_s3] sm:$0xff]  ;;  %v179_v10 = vld [vmem:[%s152_s3 + $0x8] sm:$0xff]  ;;  %611 = vmatprep.subr.bf16.mxu1 %v862_v12  ;;  %619 = vmatprep.mubr.msk.bf16.mxu1 %vm863_vm1, %v862_v12  ;;  %v394_v24 = vshrl.u32 %v393_v23, 7  ;;  %v397_v25 = vand.u32 127, %v393_v23  ;;  %vm402_vm3 = vcmask 130048   ;;  %s176_s15 = scalar_lea.vmem [#allocation7], %s577_s29 }
  0x5b   : > { %v180_v11 = vpack.c.bf16 %v179_v10, %v178_v9  ;;  %v713_v13 = vld [vmem:[#allocation5 + $0x8] ss:$12 sps:$4 sm:$0xff]   ;;  %v715_v15 = vld [vmem:[#allocation5 + $0x38] ss:$12 sps:$4 sm:$0xff]   ;;  %v716_v16 = vld [vmem:[#allocation5 + $0x50] ss:$12 sps:$4 sm:$0xff]  }
  0x5c   : > { %268 = vmatpush1.bf16.msra.mxu0 %v706_v4  ;;  %612 = vmatpush3.bf16.msra.mxu1 %v713_v13  ;;  %v395_v26 = vadd.s32 8, %v394_v24  ;;  %vm398_vm2 = vcmp.le.s32.totalorder %v397_v25, %v394_v24  ;;  %s486_s17 = sshll.u32 %s176_s15, 4  ;;  %s601_s27 = sshll.u32 %s903_s13, 8  ;;  %s1040_s17 = int_to_ptr.vmem [resolvable:$true] %s486_s17 }
  0x5d   : > { %269 = vmatprep.subr.bf16.mxu0 %v707_v5  ;;  %613 = vmatprep.subr.bf16.mxu1 %v862_v12  ;;  %s1045_s28 = scalar_lea.hbm %s1090_s2, %s601_s27  ;;  %s473_s13 = scalar_lea.sflag [#allocation4], %s1013_s19 }
  0x5e   : > { %vm399_vm4 = vcmp.le.s32.totalorder %v397_v25, %v395_v26  ;;  %s783_s4 = scalar_lea.vmem %s1040_s17, 256  ;;  %s864_s5 = smov [#allocation7]  }
  0x5f   : > { %p784_p1 = scmp.ne.s32.totalorder %s1040_s17, %s783_s4  ;;  %s787_s6 = sshll.u32 %s864_s5, 4  ;;  %s788_s6 = int_to_ptr.vmem [resolvable:$false] %s787_s6 }
  0x60   : > { %270 = vmatpush1.bf16.msra.mxu0 %v709_v6  ;;  %614 = vmatpush3.bf16.msra.mxu1 %v714_v14  ;;  %s789_s7 = scalar_lea.vmem %s788_s6, 512  ;;  %p790_p8 = scmp.lt.s32.totalorder %s1040_s17, %s788_s6 }
  0x61   : > { %271 = vmatprep.subr.bf16.mxu0 %v710_v7  ;;  %615 = vmatprep.subr.bf16.mxu1 %v862_v12  ;;  %p785_p4 = pnand %p784_p1, %p965_p12  ;;  %p791_p13 = scmp.lt.s32.totalorder %s789_s7, %s783_s4 }
  0x63   : > { %p786_p6 = pneg %p785_p4  ;;  %p792_p3 = por %p791_p13, %p790_p8 }
  0x64   : > { %272 = vmatpush1.bf16.msra.mxu0 %v712_v8  ;;  %616 = vmatpush3.bf16.msra.mxu1 %v715_v15 }
  0x65   : > { %623 = vmatprep.subr.bf16.mxu0 %v862_v12  ;;  %617 = vmatprep.subr.bf16.mxu1 %v862_v12  ;;  %p793_p7 = pnand %p792_p3, %p786_p6 }
  0x67   : > { %592 = vmatmul.mubr.msk.bf16.vlgmr.msra.gmra.mrb[0].mxu0 %vm261_vm0, %v180_v11 }
  0x68   : > { %625 = vmatprep.mubr.msk.bf16.mxu0 %vm863_vm1, %v862_v12  ;;  %618 = vmatpush3.bf16.msra.mxu1 %v716_v16 }
  0x69   : > { %629 = vmatprep.subr.bf16.mxu1 %v862_v12 }
  0x6b   : > { %620 = vmatmul.mubr.msk.bf16.vlgmr.msra.gmra.mrb[0].mxu1 %vm261_vm0, %v180_v11 }
  0x6c   : > { %631 = vmatprep.mubr.msk.bf16.mxu1 %vm863_vm1, %v862_v12 }
 0x13a   : > { %v299_v17 = vpop.f32.mrb[0].mxu0 }
 0x13b   : > { %v301_v18 = vpop.f32.mrb[1].mxu0 }
 0x13c   : > { %v303_v19 = vpop.f32.mrb[2].mxu0 }
 0x13d   : > { %v349_v20 = vpack.c.bf16 %v303_v19, %v299_v17  ;;  %v305_v21 = vpop.f32.mrb[3].mxu0 }
 0x13e   : > { %v350_v22 = vpack.c.bf16 %v305_v21, %v301_v18  ;;  %v342_v35 = vpop.f32.mrb[0].mxu1 }
 0x13f   : > { %v621_v36 = vpop.f32.mrb[1].mxu1 }
 0x140   : > { %624 = vmatpush3.bf16.xpose.msra.mxu0 %v350_v22  ;;  %v345_v37 = vpop.f32.mrb[2].mxu1 }
 0x141   : > { %v351_v38 = vpack.c.bf16 %v345_v37, %v342_v35  ;;  %v622_v39 = vpop.f32.mrb[3].mxu1 }
 0x143   : > { %630 = vmatpush3.bf16.msra.mxu1 %v351_v38 }
 0x147   : > { %626 = vmatmul.mubr.bf16.vlgmr.msra.gmra.mrb[4].mxu0 %v349_v20 }
 0x21a   : > { %v386_v27 = vpop.f32.mrb[4].mxu0 }
 0x21b   : > { %v400_v28 = vsel %vm398_vm2, %v386_v27, -1e+30  ;;  %v627_v29 = vpop.f32.mrb[5].mxu0 }
 0x21c   : > { %v389_v30 = vpop.f32.mrb[6].mxu0  ;;  %v403_v31 = vsel %vm402_vm3, %v400_v28, -inf }
 0x21d   : > { %v401_v32 = vsel %vm399_vm4, %v389_v30, -1e+30  ;;  %404 = vmax.xlane.f32.xlu0 %v403_v31  ;;  %v628_v33 = vpop.f32.mrb[7].mxu0 }
 0x21e   : > { %v406_v34 = vsel %vm402_vm3, %v401_v32, -inf }
 0x221   : > { %407 = vmax.xlane.f32.xlu0 %v406_v34 }
 0x2aa   : > { %v405_v40 = vpop.xlane.xlu0 %404 }
 0x2ab   : > { %v409_v41 = vsub.f32 %v400_v28, %v405_v40 }
 0x2ad   : > { %v411_v42 = vmul.f32 1.442695, %v409_v41 }
 0x2ae   : > { %v408_v43 = vpop.xlane.xlu0 %407 }
 0x2af   : > { %717 = vpow2.f32 %v411_v42  ;;  %v410_v44 = vsub.f32 %v401_v32, %v408_v43 }
 0x2b1   : > { %v413_v45 = vmul.f32 1.442695, %v410_v44 }
 0x2b3   : > { %719 = vpow2.f32 %v413_v45 }
 0x2b9   : > { %v718_v46 = vpop.eup %717 }
 0x2ba   : > { %v415_v47 = vsel %vm402_vm3, %v718_v46, 0.0 }
 0x2bb   : > { %416 = vadd.xlane.f32.xlu1 %v415_v47 }
 0x2bd   : > { %v720_v48 = vpop.eup %719 }
 0x2be   : > { %v418_v49 = vsel %vm402_vm3, %v720_v48, 0.0  ;;  %v421_v50 = vpack.c.bf16 %v720_v48, %v718_v46 }
 0x2bf   : > { %419 = vadd.xlane.f32.xlu1 %v418_v49 }
 0x2c0   : > { %632 = vmatmul.mubr.msk.bf16.vlgmr.msra.gmra.mrb[4].mxu1 %vm402_vm3, %v421_v50 }
 0x348   : > { %v417_v51 = vpop.xlane.xlu1 %416 }
 0x349   : > { %721 = vrcp.f32 %v417_v51 }
 0x34c   : > { %v420_v52 = vpop.xlane.xlu1 %419 }
 0x34d   : > { %723 = vrcp.f32 %v420_v52 }
 0x353   : > { %v722_v53 = vpop.eup %721 }
 0x357   : > { %v724_v57 = vpop.eup %723 }
 0x393   : > { %v459_v54 = vpop.f32.mrb[4].mxu1 }
 0x394   : > { %v468_v55 = vmul.f32 %v722_v53, %v459_v54  ;;  %v633_v56 = vpop.f32.mrb[5].mxu1 }
 0x395   : > { %v462_v58 = vpop.f32.mrb[6].mxu1 }
 0x396   : > { %470 = vst [vmem:[%s176_s15] sm:$0xff] %v468_v55  ;;  %v469_v59 = vmul.f32 %v724_v57, %v462_v58  ;;  %v634_v60 = vpop.f32.mrb[7].mxu1 }
 0x398   : > { %471 = vst [vmem:[%s176_s15 + $0x8] sm:$0xff] %v469_v59 }
 0x399   : > { %796 = shalt.err (!%p793_p7)
}
 0x39a   : > { %s797_s18 = scalar_lea.hbm %s1045_s28, 256  ;;  %s801_s20 = scalar_lea.hbm %s1090_s2, 1024 }
 0x39b   : > { %p798_p9 = scmp.ne.s32.totalorder %s1045_s28, %s797_s18  ;;  %p802_p5 = scmp.lt.u32.totalorder %s1045_s28, %s1090_s2 }
 0x39c   : > { %p803_p10 = scmp.lt.u32.totalorder %s801_s20, %s797_s18  ;;  %p805_p1 = scmp.lt.u32.totalorder %s797_s18, %s1045_s28 }
 0x39d   : > { %p799_p11 = pnand %p798_p9, %p965_p12 }
 0x39e   : > { %p804_p2 = por %p803_p10, %p802_p5 }
 0x39f   : > { %p800_p0 = pneg %p799_p11 }
 0x3a0   : > { %p806_p4 = por %p805_p1, %p804_p2 }
 0x3a2   : > { %p807_p6 = pnand %p806_p4, %p800_p0 }
 0x3a4   : > { %810 = shalt.err (!%p807_p6)
}
 0x3a5   : > { %s865_s30 = smov 128   ;;  %s866_s3 = smov 8  }
 0x3a6   : > { %641 = dma.vmem_to_hbm [thread:$0]  (%p965_p12), %s1040_s17, 256, %s1045_s28, %s473_s13, %s865_s30, %s865_s30, %s866_s3  }
 0x3a7 PF: > { %p658_p8 = scmp.ge.s32.totalorder %s853_s12, 2  ;;  %s501_s15 = sand.u32 1, %s841_s9  }
 0x3a8   : > { %p1105_p13 = scmp.ne.s32.totalorder %s1095_s16, 0  ;;  %s502_s27 = scalar_lea.sflag [#allocation4], %s501_s15 }
 0x3aa   : > { %p652_p3 = pnand %p658_p8, %p1105_p13 }
 0x3ac   : > { %836 = dma.done.wait (!%p652_p3), %s502_s27, 256  }
 0x3ad   : > { %838 = vsyncadd (!%p652_p3), %s502_s27, 4294967040  ;;  %p16_p7 = scmp.ge.s32.totalorder %s935_s21, 6   ;;  %s1106_s9 = smov %s845_s10 }
 0x3ae   : > { %s1107_s10 = smov %s849_s11  ;;  %s1108_s11 = smov %s961_s8 }
 0x3af   : > { %s1109_s12 = smov %s935_s21  ;;  %18 = sbr.rel (!%p16_p7) target bundleno = 6 (0x6), region = 77 }
 0x3b6   :  { %507 = vsyncpa [#allocation3], 1 }
 0x3b7   :  { %509 = vsyncpa [#allocation3 + $0x1], 1 }
 0x3b8   :  { %510 = vsyncpa [#allocation6], 1 }
 0x3b9   :  { %511 = vsyncpa [#allocation4], 1 }
 0x3ba   :  { %513 = vsyncpa [#allocation4 + $0x1], 1 }

</bundles_post_ra>
